<compile_context>
chip_gen: v6e
topology: v6e:2x2x1
jax: 0.10.0
libtpu: 0.0.40
codegen_flags: <defaults>
</compile_context>

<pallas_src>
import jax
import jax.numpy as jnp
from jax.experimental import pallas as pl
from jax.experimental.pallas import tpu as pltpu


def _rnn_fc_kernel(x_ref, wih_ref, bias_ref, whh_ref, pw_ref, pb_ref, out_ref):
    """Single-invocation kernel (no grid).

    x_ref    : (S*B, I) f32   time-major input, flattened to a dense 2-D slab
    wih_ref  : (I, H)   bf16  W_ih^T
    bias_ref : (1, H)   f32   b_ih + b_hh (pre-fused)
    whh_ref  : (H, H)   bf16  W_hh^T
    pw_ref   : (1, H)   f32   Pred weight (row vector)
    pb_ref   : (1, 1)   f32   Pred bias (SMEM scalar)
    out_ref  : (B, 1)   f32   final prediction (single store)
    """
    B = out_ref.shape[0]
    S = x_ref.shape[0] // B

    # (1)+(2)+(3) Fused input projection: ONE MXU dot for all S timesteps,
    # bf16 inputs / f32 accumulation.  Result is a dense (S*B, H) slab that
    # stays in vregs -- never round-trips HBM.
    xp = (
        jnp.dot(x_ref[...].astype(jnp.bfloat16), wih_ref[...],
                preferred_element_type=jnp.float32)
        + bias_ref[...]
    )

    whh = whh_ref[...]  # bf16 (H, H); load hoisted out of the serial chain

    # h_0 = 0  =>  first step is tanh of the projection only (skip the 0-matmul).
    h = jnp.tanh(xp[0:B, :])

    # Static, fully-unrolled recurrence (S is a small compile-time constant).
    # Only the (B,H)x(H,H) bf16 dot sits on the serial critical path; tanh is f32.
    for t in range(1, S):
        h = jnp.tanh(
            jnp.dot(h.astype(jnp.bfloat16), whh,
                    preferred_element_type=jnp.float32)
            + xp[t * B:(t + 1) * B, :]
        )

    # (4) Linear head off the MXU: VPU multiply + XLU lane reduction in f32,
    # plus an SMEM scalar bias.  Removes the trailing MXU latency and the
    # padded (H,1) weight tile.
    out = jnp.sum(h * pw_ref[...], axis=-1, keepdims=True) + pb_ref[0, 0]  # (B, 1)
    out_ref[...] = out.astype(out_ref.dtype)
    # NOTE (review item 5): at B=4 this masked (B,1) store is negligible; if the
    # batch or head width grows, emit a lane-dense (1, B) / (B, multiple-of-128)
    # output instead.


def prepare_params(w_ih, w_hh, b_ih, b_hh, pred_w, pred_b):
    """One-time weight prep (transposes, bias fusion, bf16 casts), hoisted out
    of the per-call forward.  PyTorch shapes: w_ih (H,I), w_hh (H,H), b_ih (H,),
    b_hh (H,), pred_w (1,H), pred_b (1,)."""
    H = w_ih.shape[0]
    return {
        "wih_t": jnp.asarray(w_ih, jnp.float32).T.astype(jnp.bfloat16),  # (I, H)
        "whh_t": jnp.asarray(w_hh, jnp.float32).T.astype(jnp.bfloat16),  # (H, H)
        "bias": (jnp.asarray(b_ih, jnp.float32)
                 + jnp.asarray(b_hh, jnp.float32)).reshape(1, H),        # (1, H)
        "pw": jnp.asarray(pred_w, jnp.float32).reshape(1, H),            # (1, H)
        "pb": jnp.asarray(pred_b, jnp.float32).reshape(1, 1),            # (1, 1)
    }


@jax.jit
def rnn_fc_forward(x, params):
    """x: (S, B, I) time-major (PyTorch nn.RNN default, batch_first=False).
    Returns the squeezed prediction (B,) — matches torch.squeeze(output)."""
    S, B, I = x.shape
    # Time-major flatten: row t*B + b == x[t, b].  Pure layout; no compute here.
    x2d = x.astype(jnp.float32).reshape(S * B, I)

    # NOTE (review items 6/7): at these KB-scale shapes a single grid-less call
    # on one TensorCore is optimal.  If batch grows, add a leading batch grid
    # axis with dimension_semantics=("parallel",) (v7x: 2 TCs) and size the
    # per-block VMEM footprint against v7x's 64 MiB physical / 32 MiB scoped
    # default (set vmem_limit_bytes explicitly).
    out = pl.pallas_call(
        _rnn_fc_kernel,
        out_shape=jax.ShapeDtypeStruct((B, 1), jnp.float32),
        in_specs=[
            pl.BlockSpec(memory_space=pltpu.MemorySpace.VMEM),  # x (S*B, I)
            pl.BlockSpec(memory_space=pltpu.MemorySpace.VMEM),  # W_ih^T (bf16)
            pl.BlockSpec(memory_space=pltpu.MemorySpace.VMEM),  # fused bias
            pl.BlockSpec(memory_space=pltpu.MemorySpace.VMEM),  # W_hh^T (bf16)
            pl.BlockSpec(memory_space=pltpu.MemorySpace.VMEM),  # pred weight
            pl.BlockSpec(memory_space=pltpu.MemorySpace.SMEM),  # pred bias scalar
        ],
        out_specs=pl.BlockSpec(memory_space=pltpu.MemorySpace.VMEM),
    )(x2d, params["wih_t"], params["bias"], params["whh_t"],
      params["pw"], params["pb"])

    return jnp.squeeze(out)


def rnn_fc_reference(x, w_ih, w_hh, b_ih, b_hh, pred_w, pred_b,
                     mxu_dtype=jnp.float32):
    """Pure-JAX reference mirroring nn.RNN (tanh) + nn.Linear.
    mxu_dtype=bfloat16 mimics the kernel's bf16-operand / f32-accumulate math."""
    S, B, I = x.shape
    H = w_ih.shape[0]
    wih_t = jnp.asarray(w_ih, jnp.float32).T.astype(mxu_dtype)
    whh_t = jnp.asarray(w_hh, jnp.float32).T.astype(mxu_dtype)
    h = jnp.zeros((B, H), jnp.float32)
    for t in range(S):
        pre = (jnp.dot(x[t].astype(mxu_dtype), wih_t,
                       preferred_element_type=jnp.float32)
               + jnp.dot(h.astype(mxu_dtype), whh_t,
                         preferred_element_type=jnp.float32)
               + b_ih + b_hh)
        h = jnp.tanh(pre)
    out = h @ pred_w.T + pred_b
    return jnp.squeeze(out)


if __name__ == "__main__":
    # Small shapes consistent with the module's forward (seq=8, batch=4,
    # input_size=16, hidden_size=32).
    S, B, I, H = 8, 4, 16, 32

    key = jax.random.PRNGKey(0)
    ks = jax.random.split(key, 7)
    bound = 1.0 / (H ** 0.5)   # PyTorch RNN/Linear uniform init bound

    x = jax.random.normal(ks[0], (S, B, I), jnp.float32)
    w_ih = jax.random.uniform(ks[1], (H, I), jnp.float32, -bound, bound)
    w_hh = jax.random.uniform(ks[2], (H, H), jnp.float32, -bound, bound)
    b_ih = jax.random.uniform(ks[3], (H,), jnp.float32, -bound, bound)
    b_hh = jax.random.uniform(ks[4], (H,), jnp.float32, -bound, bound)
    pred_w = jax.random.uniform(ks[5], (1, H), jnp.float32, -bound, bound)
    pred_b = jax.random.uniform(ks[6], (1,), jnp.float32, -bound, bound)

    params = prepare_params(w_ih, w_hh, b_ih, b_hh, pred_w, pred_b)
    out = rnn_fc_forward(x, params)
    out = jax.block_until_ready(out)
    assert out.shape == (B,), out.shape

    # Tight check vs. a reference that mirrors the kernel's bf16-operand /
    # f32-accumulate MXU math.
    ref_bf16 = rnn_fc_reference(x, w_ih, w_hh, b_ih, b_hh, pred_w, pred_b,
                                mxu_dtype=jnp.bfloat16)
    assert jnp.allclose(out, ref_bf16, atol=5e-3, rtol=5e-3), (out, ref_bf16)

    # Loose sanity check vs. the full-precision reference (bf16-input tolerance
    # over an S=8 tanh-bounded recurrence).
    ref_f32 = rnn_fc_reference(x, w_ih, w_hh, b_ih, b_hh, pred_w, pred_b)
    assert jnp.allclose(out, ref_f32, atol=1e-1, rtol=1e-1), (out, ref_f32)

    print("KERNEL_OK")
</pallas_src>

<mosaic_0001>
module attributes {stable_mosaic.version = 11 : i64} {
  func.func @_rnn_fc_kernel(%arg0: memref<32x16xf32, #tpu.memory_space<vmem>>, %arg1: memref<16x32xbf16, #tpu.memory_space<vmem>>, %arg2: memref<1x32xf32, #tpu.memory_space<vmem>>, %arg3: memref<32x32xbf16, #tpu.memory_space<vmem>>, %arg4: memref<1x32xf32, #tpu.memory_space<vmem>>, %arg5: memref<1x1xf32, #tpu.memory_space<smem>>, %arg6: memref<4x1xf32, #tpu.memory_space<vmem>>) attributes {dimension_semantics = [], scalar_prefetch = 0 : i64, scratch_operands = 0 : i64, tpu.core_type = #tpu.core_type<tc>} {
    %c0 = arith.constant 0 : index
    %c0_0 = arith.constant 0 : index
    %0 = vector.load %arg0[%c0, %c0_0] : memref<32x16xf32, #tpu.memory_space<vmem>>, vector<32x16xf32>
    %1 = arith.truncf %0 : vector<32x16xf32> to vector<32x16xbf16>
    %c0_1 = arith.constant 0 : index
    %c0_2 = arith.constant 0 : index
    %2 = vector.load %arg1[%c0_1, %c0_2] : memref<16x32xbf16, #tpu.memory_space<vmem>>, vector<16x32xbf16>
    %cst = arith.constant dense<0.000000e+00> : vector<32x32xf32>
    %3 = tpu.matmul %1, %2, %cst {dimension_numbers = #tpu.dot_dimension_numbers<[1], [0], [0], [1], [0, 0, 1, 1], [], []>} : vector<32x16xbf16>, vector<16x32xbf16>, vector<32x32xf32> -> vector<32x32xf32>
    %c0_3 = arith.constant 0 : index
    %c0_4 = arith.constant 0 : index
    %4 = vector.load %arg2[%c0_3, %c0_4] : memref<1x32xf32, #tpu.memory_space<vmem>>, vector<1x32xf32>
    %5 = vector.broadcast %4 : vector<1x32xf32> to vector<32x32xf32>
    %6 = arith.addf %3, %5 : vector<32x32xf32>
    %c0_5 = arith.constant 0 : index
    %c0_6 = arith.constant 0 : index
    %7 = vector.load %arg3[%c0_5, %c0_6] : memref<32x32xbf16, #tpu.memory_space<vmem>>, vector<32x32xbf16>
    %8 = vector.extract_strided_slice %6 {offsets = [0, 0], sizes = [4, 32], strides = [1, 1]} : vector<32x32xf32> to vector<4x32xf32>
    %9 = math.tanh %8 : vector<4x32xf32>
    %10 = arith.truncf %9 : vector<4x32xf32> to vector<4x32xbf16>
    %cst_7 = arith.constant dense<0.000000e+00> : vector<4x32xf32>
    %11 = tpu.matmul %10, %7, %cst_7 {dimension_numbers = #tpu.dot_dimension_numbers<[1], [0], [0], [1], [0, 0, 1, 1], [], []>} : vector<4x32xbf16>, vector<32x32xbf16>, vector<4x32xf32> -> vector<4x32xf32>
    %12 = vector.extract_strided_slice %6 {offsets = [4, 0], sizes = [4, 32], strides = [1, 1]} : vector<32x32xf32> to vector<4x32xf32>
    %13 = arith.addf %11, %12 : vector<4x32xf32>
    %14 = math.tanh %13 : vector<4x32xf32>
    %15 = arith.truncf %14 : vector<4x32xf32> to vector<4x32xbf16>
    %cst_8 = arith.constant dense<0.000000e+00> : vector<4x32xf32>
    %16 = tpu.matmul %15, %7, %cst_8 {dimension_numbers = #tpu.dot_dimension_numbers<[1], [0], [0], [1], [0, 0, 1, 1], [], []>} : vector<4x32xbf16>, vector<32x32xbf16>, vector<4x32xf32> -> vector<4x32xf32>
    %17 = vector.extract_strided_slice %6 {offsets = [8, 0], sizes = [4, 32], strides = [1, 1]} : vector<32x32xf32> to vector<4x32xf32>
    %18 = arith.addf %16, %17 : vector<4x32xf32>
    %19 = math.tanh %18 : vector<4x32xf32>
    %20 = arith.truncf %19 : vector<4x32xf32> to vector<4x32xbf16>
    %cst_9 = arith.constant dense<0.000000e+00> : vector<4x32xf32>
    %21 = tpu.matmul %20, %7, %cst_9 {dimension_numbers = #tpu.dot_dimension_numbers<[1], [0], [0], [1], [0, 0, 1, 1], [], []>} : vector<4x32xbf16>, vector<32x32xbf16>, vector<4x32xf32> -> vector<4x32xf32>
    %22 = vector.extract_strided_slice %6 {offsets = [12, 0], sizes = [4, 32], strides = [1, 1]} : vector<32x32xf32> to vector<4x32xf32>
    %23 = arith.addf %21, %22 : vector<4x32xf32>
    %24 = math.tanh %23 : vector<4x32xf32>
    %25 = arith.truncf %24 : vector<4x32xf32> to vector<4x32xbf16>
    %cst_10 = arith.constant dense<0.000000e+00> : vector<4x32xf32>
    %26 = tpu.matmul %25, %7, %cst_10 {dimension_numbers = #tpu.dot_dimension_numbers<[1], [0], [0], [1], [0, 0, 1, 1], [], []>} : vector<4x32xbf16>, vector<32x32xbf16>, vector<4x32xf32> -> vector<4x32xf32>
    %27 = vector.extract_strided_slice %6 {offsets = [16, 0], sizes = [4, 32], strides = [1, 1]} : vector<32x32xf32> to vector<4x32xf32>
    %28 = arith.addf %26, %27 : vector<4x32xf32>
    %29 = math.tanh %28 : vector<4x32xf32>
    %30 = arith.truncf %29 : vector<4x32xf32> to vector<4x32xbf16>
    %cst_11 = arith.constant dense<0.000000e+00> : vector<4x32xf32>
    %31 = tpu.matmul %30, %7, %cst_11 {dimension_numbers = #tpu.dot_dimension_numbers<[1], [0], [0], [1], [0, 0, 1, 1], [], []>} : vector<4x32xbf16>, vector<32x32xbf16>, vector<4x32xf32> -> vector<4x32xf32>
    %32 = vector.extract_strided_slice %6 {offsets = [20, 0], sizes = [4, 32], strides = [1, 1]} : vector<32x32xf32> to vector<4x32xf32>
    %33 = arith.addf %31, %32 : vector<4x32xf32>
    %34 = math.tanh %33 : vector<4x32xf32>
    %35 = arith.truncf %34 : vector<4x32xf32> to vector<4x32xbf16>
    %cst_12 = arith.constant dense<0.000000e+00> : vector<4x32xf32>
    %36 = tpu.matmul %35, %7, %cst_12 {dimension_numbers = #tpu.dot_dimension_numbers<[1], [0], [0], [1], [0, 0, 1, 1], [], []>} : vector<4x32xbf16>, vector<32x32xbf16>, vector<4x32xf32> -> vector<4x32xf32>
    %37 = vector.extract_strided_slice %6 {offsets = [24, 0], sizes = [4, 32], strides = [1, 1]} : vector<32x32xf32> to vector<4x32xf32>
    %38 = arith.addf %36, %37 : vector<4x32xf32>
    %39 = math.tanh %38 : vector<4x32xf32>
    %40 = arith.truncf %39 : vector<4x32xf32> to vector<4x32xbf16>
    %cst_13 = arith.constant dense<0.000000e+00> : vector<4x32xf32>
    %41 = tpu.matmul %40, %7, %cst_13 {dimension_numbers = #tpu.dot_dimension_numbers<[1], [0], [0], [1], [0, 0, 1, 1], [], []>} : vector<4x32xbf16>, vector<32x32xbf16>, vector<4x32xf32> -> vector<4x32xf32>
    %42 = vector.extract_strided_slice %6 {offsets = [28, 0], sizes = [4, 32], strides = [1, 1]} : vector<32x32xf32> to vector<4x32xf32>
    %43 = arith.addf %41, %42 : vector<4x32xf32>
    %44 = math.tanh %43 : vector<4x32xf32>
    %c0_14 = arith.constant 0 : index
    %c0_15 = arith.constant 0 : index
    %45 = vector.load %arg4[%c0_14, %c0_15] : memref<1x32xf32, #tpu.memory_space<vmem>>, vector<1x32xf32>
    %46 = vector.broadcast %45 : vector<1x32xf32> to vector<4x32xf32>
    %47 = arith.mulf %44, %46 : vector<4x32xf32>
    %cst_16 = arith.constant dense<0.000000e+00> : vector<4xf32>
    %48 = vector.multi_reduction <add>, %47, %cst_16 [1] : vector<4x32xf32> to vector<4xf32>
    %49 = vector.shape_cast %48 : vector<4xf32> to vector<4x1xf32>
    %c0_17 = arith.constant 0 : index
    %c0_18 = arith.constant 0 : index
    %50 = memref.load %arg5[%c0_17, %c0_18] : memref<1x1xf32, #tpu.memory_space<smem>>
    %51 = vector.broadcast %50 : f32 to vector<4x1xf32>
    %52 = arith.addf %49, %51 : vector<4x1xf32>
    %c0_19 = arith.constant 0 : index
    %c0_20 = arith.constant 0 : index
    %53 = vector.load %arg6[%c0_19, %c0_20] : memref<4x1xf32, #tpu.memory_space<vmem>>, vector<4x1xf32>
    tpu.vector_store %arg6[%c0_19, %c0_20], %52 {strides = array<i32>} : memref<4x1xf32, #tpu.memory_space<vmem>>, vector<4x1xf32>,
    return
  }
}

</mosaic_0001>

<bundles_post_ra>
// kernel: rnn_fc_forward.1
= control target key start
LH: loop header
LB: loop body
LE: loop exit
PB: predicated region body
PF: predicated region fallthrough
CT: control target
= control target key end

     0   :  { %12 = vsyncpa [#allocation4], 0  ;;  %s794_s0 = inlined_call_operand.hbm [shape: f32[32,16], index: 0, kind: input, shape index: {}]   ;;  %s795_s1 = inlined_call_operand.vmem [shape: bf16[16,32], index: 1, kind: input, shape index: {}]   ;;  %s796_s2 = inlined_call_operand.vmem [shape: f32[1,32], index: 2, kind: input, shape index: {}]   ;;  %s797_s3 = inlined_call_operand.hbm [shape: bf16[32,32], index: 3, kind: input, shape index: {}]   ;;  %s798_s4 = inlined_call_operand.vmem [shape: f32[1,32], index: 4, kind: input, shape index: {}]   ;;  %s799_s5 = inlined_call_operand.<no memory space> [shape: f32[1,1], index: 5, kind: input, shape index: {}]   ;;  %s800_s6 = inlined_call_operand.vmem [shape: f32[4,1], index: 6, kind: output, shape index: {}]  }
   0x1   :  { %13 = vsyncpa [#allocation6], 0  ;;  %s669_s21 = smov [#allocation3]  }
   0x2   :  { %s19_s22 = sshll.u32 %s669_s21, 4  ;;  %s20_s22 = int_to_ptr.vmem [resolvable:$true] %s19_s22 }
   0x3   :  { %s633_s23 = scalar_lea.vmem %s20_s22, 512  ;;  %p638_p1 = scmp.lt.s32.totalorder %s20_s22, %s20_s22 }
   0x4   :  { %p634_p0 = scmp.ne.s32.totalorder %s20_s22, %s633_s23  ;;  %p639_p2 = scmp.lt.s32.totalorder %s633_s23, %s633_s23 }
   0x6   :  { %p640_p3 = por %p639_p2, %p638_p1 }
   0x8   :  { %p641_p4 = pnand %p640_p3, %p634_p0 }
   0xa   :  { %644 = shalt.err (!%p641_p4)
}
   0xb   :  { %s670_s24 = smov 128   ;;  %s671_s25 = smov 8  }
   0xc   :  { %25 = dma.hbm_to_vmem [thread:$0]  %s794_s0, 512, %s20_s22, [#allocation4], %s670_s24, %s670_s24, %s671_s25  }
   0xd   :  { %s672_s28 = smov [#allocation5]  }
   0xe   :  { %s35_s29 = sshll.u32 %s672_s28, 4  ;;  %s36_s29 = int_to_ptr.vmem [resolvable:$true] %s35_s29 }
   0xf   :  { %s653_s30 = scalar_lea.vmem %s36_s29, 256  ;;  %p658_p6 = scmp.lt.s32.totalorder %s36_s29, %s36_s29 }
  0x10   :  { %p654_p5 = scmp.ne.s32.totalorder %s36_s29, %s653_s30  ;;  %p659_p7 = scmp.lt.s32.totalorder %s653_s30, %s653_s30 }
  0x12   :  { %p660_p8 = por %p659_p7, %p658_p6 }
  0x14   :  { %p661_p9 = pnand %p660_p8, %p654_p5 }
  0x16   :  { %664 = shalt.err (!%p661_p9)
}
  0x17   :  { %s673_s7 = smov 64   ;;  %s674_s8 = smov 4  }
  0x18   :  { %41 = dma.hbm_to_vmem [thread:$0]  %s797_s3, 256, %s36_s29, [#allocation6], %s673_s7, %s673_s7, %s674_s8  }
  0x19   :  { %665 = dma.done.wait [#allocation4], 512  }
  0x1a   :  { %666 = vsyncadd [#allocation4], 4294966784 }
  0x1b   :  { %667 = dma.done.wait [#allocation6], 256  }
  0x1c   :  { %668 = vsyncadd [#allocation6], 4294967040  ;;  %v606_v0 = vld [vmem:[%s795_s1] sm:$0xff]   ;;  %v54_v2 = vld [vmem:[#allocation3 + $0x8] sm:$0xff]  ;;  %vm74_vm0 = vcmask 130048   ;;  %v675_v8 = vmov 0.0  }
  0x1d   :  { %v53_v1 = vld [vmem:[#allocation3] sm:$0xff]  ;;  %v55_v3 = vld [vmem:[#allocation3 + $0x10] sm:$0xff]  ;;  %536 = vmatprep.subr.bf16.mxu0 %v606_v0  ;;  %v56_v5 = vld [vmem:[#allocation3 + $0x18] sm:$0xff]  ;;  %542 = vmatprep.subr.bf16.mxu1 %v675_v8  ;;  %vm676_vm1 = vmmov 0   ;;  %vm151_vm2 = vcmask 261120   ;;  %vm483_vm3 = vcmask 257024  }
  0x1e   :  { %v57_v4 = vpack.c.bf16 %v54_v2, %v53_v1  ;;  %537 = vmatpush3.bf16.msra.mxu0 %v606_v0  ;;  %v58_v6 = vpack.c.bf16 %v56_v5, %v55_v3  ;;  %v721_v7 = vld [vmem:[#allocation5 + $0x8] sm:$0xff]   ;;  %v729_v9 = vld [vmem:[#allocation5] sm:$0xff]   ;;  %546 = vmatprep.mubr.msk.bf16.mxu1 %vm676_vm1, %v675_v8  ;;  %vm490_vm4 = vcmask 3072  }
  0x1f   :  { %550 = vmatprep.subr.bf16.mxu0 %v675_v8  ;;  %543 = vmatpush3.bf16.msra.mxu1 %v721_v7  ;;  %v498_v10 = vld [vmem:[%s796_s2] ss:$0 sm:$0xff] }
  0x20   :  { %538 = vmatprep.mubr.msk.bf16.mxu0 %vm74_vm0, %v57_v4  ;;  %544 = vmatprep.subr.bf16.mxu1 %v675_v8 }
  0x21   :  { %539 = vmatmul.mubr.msk.bf16.vlgmr.msra.gmra.mxu0 %vm74_vm0, %v58_v6 }
  0x22   :  { %551 = vmatpush3.bf16.msra.mxu0 %v721_v7  ;;  %554 = vmatprep.mubr.msk.bf16.mxu0 %vm676_vm1, %v675_v8 }
  0x23   :  { %552 = vmatprep.subr.bf16.mxu0 %v675_v8  ;;  %545 = vmatpush3.bf16.msra.mxu1 %v729_v9 }
  0x24   :  { %558 = vmatprep.subr.bf16.mxu1 %v675_v8 }
  0x26   :  { %553 = vmatpush3.bf16.msra.mxu0 %v729_v9 }
  0x27   :  { %566 = vmatprep.subr.bf16.mxu0 %v675_v8 }
  0xe1   :  { %v540_v11 = vpop.f32.mrf.mxu0 }
  0xe2   :  { %v742_v12 = vadd.f32 %v540_v11, %v498_v10 }
  0xe3   :  { %v115_v13 = vpop.f32.mrf.mxu0 }
  0xe4   :  { %v116_v14 = vadd.f32 %v498_v10, %v115_v13  ;;  %v336_v51 = vrot.slane %v742_v12, 4 }
  0xe5   :  { %v541_v15 = vpop.f32.mrf.mxu0 }
  0xe6   :  { %609 = vtanh.f32 %v116_v14  ;;  %v744_v16 = vadd.f32 %v541_v15, %v498_v10  ;;  %v149_v19 = vrot.slane %v116_v14, 4 }
  0xe7   :  { %v118_v27 = vpop.f32.mrf.mxu0 }
  0xe8   :  { %v119_v28 = vadd.f32 %v498_v10, %v118_v27  ;;  %v429_v2 = vrot.slane %v744_v16, 4 }
  0xea   :  { %v243_v36 = vrot.slane %v119_v28, 4 }
  0xf3   :  { %v610_v17 = vpop.eup %609 }
  0xf4   :  { %v135_v18 = vpack.c.bf16 %v610_v17, %v610_v17 }
  0xf6   :  { %547 = vmatmul.mubr.msk.bf16.vlgmr.msra.gmra.mxu1 %vm151_vm2, %v135_v18 }
  0xf7   :  { %559 = vmatpush3.bf16.msra.mxu1 %v721_v7  ;;  %562 = vmatprep.mubr.msk.bf16.mxu1 %vm676_vm1, %v675_v8 }
  0xf8   :  { %560 = vmatprep.subr.bf16.mxu1 %v675_v8 }
  0xfb   :  { %561 = vmatpush3.bf16.msra.mxu1 %v729_v9 }
  0xfc   :  { %574 = vmatprep.subr.bf16.mxu1 %v675_v8 }
 0x1b6   :  { %v189_v20 = vpop.f32.mrf.mxu1 }
 0x1b7   :  { %v190_v21 = vadd.f32 %v189_v20, %v149_v19 }
 0x1b8   :  { %v548_v22 = vpop.f32.mrf.mxu1 }
 0x1b9   :  { %611 = vtanh.f32 %v190_v21 }
 0x1ba   :  { %v192_v23 = vpop.f32.mrf.mxu1 }
 0x1bc   :  { %v549_v24 = vpop.f32.mrf.mxu1 }
 0x1c6   :  { %v612_v25 = vpop.eup %611 }
 0x1c7   :  { %v196_v26 = vpack.c.bf16 %v612_v25, %v612_v25 }
 0x1c9   :  { %555 = vmatmul.mubr.msk.bf16.vlgmr.msra.gmra.mxu0 %vm151_vm2, %v196_v26 }
 0x1ca   :  { %567 = vmatpush3.bf16.msra.mxu0 %v721_v7  ;;  %570 = vmatprep.mubr.msk.bf16.mxu0 %vm676_vm1, %v675_v8 }
 0x1cb   :  { %568 = vmatprep.subr.bf16.mxu0 %v675_v8 }
 0x1ce   :  { %569 = vmatpush3.bf16.msra.mxu0 %v729_v9 }
 0x1cf   :  { %582 = vmatprep.subr.bf16.mxu0 %v675_v8 }
 0x289   :  { %v234_v29 = vpop.f32.mrf.mxu0 }
 0x28a   :  { %v235_v30 = vadd.f32 %v234_v29, %v119_v28 }
 0x28b   :  { %v556_v31 = vpop.f32.mrf.mxu0 }
 0x28c   :  { %613 = vtanh.f32 %v235_v30 }
 0x28d   :  { %v237_v32 = vpop.f32.mrf.mxu0 }
 0x28f   :  { %v557_v33 = vpop.f32.mrf.mxu0 }
 0x299   :  { %v614_v34 = vpop.eup %613 }
 0x29a   :  { %v241_v35 = vpack.c.bf16 %v614_v34, %v614_v34 }
 0x29c   :  { %563 = vmatmul.mubr.msk.bf16.vlgmr.msra.gmra.mxu1 %vm151_vm2, %v241_v35 }
 0x29d   :  { %575 = vmatpush3.bf16.msra.mxu1 %v721_v7  ;;  %578 = vmatprep.mubr.msk.bf16.mxu1 %vm676_vm1, %v675_v8 }
 0x29e   :  { %576 = vmatprep.subr.bf16.mxu1 %v675_v8 }
 0x2a1   :  { %577 = vmatpush3.bf16.msra.mxu1 %v729_v9 }
 0x2a2   :  { %590 = vmatprep.subr.bf16.mxu1 %v675_v8 }
 0x35c   :  { %v282_v37 = vpop.f32.mrf.mxu1 }
 0x35d   :  { %v283_v38 = vadd.f32 %v282_v37, %v243_v36 }
 0x35e   :  { %v564_v39 = vpop.f32.mrf.mxu1 }
 0x35f   :  { %615 = vtanh.f32 %v283_v38 }
 0x360   :  { %v285_v40 = vpop.f32.mrf.mxu1 }
 0x362   :  { %v565_v41 = vpop.f32.mrf.mxu1 }
 0x36c   :  { %v616_v42 = vpop.eup %615 }
 0x36d   :  { %v289_v43 = vpack.c.bf16 %v616_v42, %v616_v42 }
 0x36f   :  { %571 = vmatmul.mubr.msk.bf16.vlgmr.msra.gmra.mxu0 %vm151_vm2, %v289_v43 }
 0x370   :  { %583 = vmatpush3.bf16.msra.mxu0 %v721_v7  ;;  %586 = vmatprep.mubr.msk.bf16.mxu0 %vm676_vm1, %v675_v8 }
 0x371   :  { %584 = vmatprep.subr.bf16.mxu0 %v675_v8 }
 0x374   :  { %585 = vmatpush3.bf16.msra.mxu0 %v729_v9 }
 0x42f   :  { %v327_v44 = vpop.f32.mrf.mxu0 }
 0x430   :  { %v328_v45 = vadd.f32 %v327_v44, %v742_v12  ;;  %v488_v12 = vstv %s799_s5 }
 0x431   :  { %v572_v46 = vpop.f32.mrf.mxu0 }
 0x432   :  { %617 = vtanh.f32 %v328_v45 }
 0x433   :  { %v330_v47 = vpop.f32.mrf.mxu0 }
 0x435   :  { %v573_v48 = vpop.f32.mrf.mxu0 }
 0x43f   :  { %v618_v49 = vpop.eup %617 }
 0x440   :  { %v334_v50 = vpack.c.bf16 %v618_v49, %v618_v49 }
 0x442   :  { %579 = vmatmul.mubr.msk.bf16.vlgmr.msra.gmra.mxu1 %vm151_vm2, %v334_v50 }
 0x443   :  { %591 = vmatpush3.bf16.msra.mxu1 %v721_v7  ;;  %594 = vmatprep.mubr.msk.bf16.mxu1 %vm676_vm1, %v675_v8 }
 0x444   :  { %592 = vmatprep.subr.bf16.mxu1 %v675_v8  ;;  %v511_v8 = vld [vmem:[%s798_s4] ss:$0 sm:$0xff] }
 0x447   :  { %593 = vmatpush3.bf16.msra.mxu1 %v729_v9 }
 0x502   :  { %v375_v52 = vpop.f32.mrf.mxu1 }
 0x503   :  { %v376_v53 = vadd.f32 %v375_v52, %v336_v51 }
 0x504   :  { %v580_v54 = vpop.f32.mrf.mxu1 }
 0x505   :  { %619 = vtanh.f32 %v376_v53 }
 0x506   :  { %v378_v55 = vpop.f32.mrf.mxu1 }
 0x508   :  { %v581_v56 = vpop.f32.mrf.mxu1 }
 0x512   :  { %v620_v57 = vpop.eup %619 }
 0x513   :  { %v382_v58 = vpack.c.bf16 %v620_v57, %v620_v57 }
 0x515   :  { %587 = vmatmul.mubr.msk.bf16.vlgmr.msra.gmra.mxu0 %vm151_vm2, %v382_v58 }
 0x5d5   :  { %v420_v59 = vpop.f32.mrf.mxu0 }
 0x5d6   :  { %v421_v60 = vadd.f32 %v420_v59, %v744_v16 }
 0x5d7   :  { %v588_v61 = vpop.f32.mrf.mxu0 }
 0x5d8   :  { %621 = vtanh.f32 %v421_v60 }
 0x5d9   :  { %v423_v62 = vpop.f32.mrf.mxu0 }
 0x5db   :  { %v589_v63 = vpop.f32.mrf.mxu0 }
 0x5e5   :  { %v622_v0 = vpop.eup %621 }
 0x5e6   :  { %v427_v1 = vpack.c.bf16 %v622_v0, %v622_v0 }
 0x5e8   :  { %595 = vmatmul.mubr.msk.bf16.vlgmr.msra.gmra.mxu1 %vm151_vm2, %v427_v1 }
 0x6a8   :  { %v468_v3 = vpop.f32.mrf.mxu1 }
 0x6a9   :  { %v469_v4 = vadd.f32 %v468_v3, %v429_v2 }
 0x6aa   :  { %v596_v5 = vpop.f32.mrf.mxu1 }
 0x6ab   :  { %623 = vtanh.f32 %v469_v4 }
 0x6ac   :  { %v471_v6 = vpop.f32.mrf.mxu1 }
 0x6ae   :  { %v597_v7 = vpop.f32.mrf.mxu1 }
 0x6b8   :  { %v624_v9 = vpop.eup %623 }
 0x6b9   :  { %v482_v10 = vmul.f32 %v624_v9, %v511_v8 }
 0x6bb   :  { %v484_v11 = vsel %vm483_vm3, %v482_v10, 0.0 }
 0x6bc   :  { %485 = vadd.xlane.f32.xlu0 %v484_v11 }
 0x745   :  { %v486_v13 = vpop.xlane.xlu0 %485 }
 0x746   :  { %v489_v14 = vadd.f32 %v488_v12, %v486_v13 }
 0x748   :  { %491 = vst.msk [vmem:[%s800_s6] sm:$0xf] %vm490_vm4, %v489_v14 }
 0x749   :  { %496 = vsyncpa [#allocation4], 1 }
 0x74a   :  { %497 = vsyncpa [#allocation6], 1 }

</bundles_post_ra>
